<compile_context>
chip_gen: v5e
topology: v5e:2x2
jax: 0.10.0
libtpu: 0.0.40
codegen_flags: <defaults>
</compile_context>

<pallas_src>
import numpy as np
import jax
import jax.numpy as jnp
from jax.experimental import pallas as pl
from jax.experimental.pallas import tpu as pltpu


# ---------------------------------------------------------------------------
# Model configuration (mirrors the PyTorch Conv1DNet3inputs instantiation)
# ---------------------------------------------------------------------------
KERNEL_SIZE = 3
INPUT_SHAPE1 = (4, 16)      # (channels, length) of x1
INPUT_SHAPE2 = (6, 16)      # (channels, length) of x2
INPUT_SHAPE3 = (8,)         # features of x3
CONV_LAYERS1 = [8, 8]
CONV_LAYERS2 = [8]
LAYERS = [16]               # net3
LAYERS_HEAD = [32, 4]       # head


def _backbone_dims(input_shape, layers):
    """Per conv block: (C_in, C_out, L_in)."""
    c, l = input_shape
    dims = []
    for cout in layers:
        dims.append((c, cout, l))
        c, l = cout, l // 2
    return tuple(dims), c, l


DIMS1, C1F, L1F = _backbone_dims(INPUT_SHAPE1, CONV_LAYERS1)   # final (8, 4)
DIMS2, C2F, L2F = _backbone_dims(INPUT_SHAPE2, CONV_LAYERS2)   # final (8, 8)
N1 = C1F * L1F                                                 # 32
N2 = C2F * L2F                                                 # 64
N3 = LAYERS[-1]                                                # 16
FLAT_DIM = N1 + N2 + N3                                        # 112 (exact torch concat order)
MAX_CIN = max(d[0] for d in DIMS1 + DIMS2)                     # 8
MAX_LIN = max(d[2] for d in DIMS1 + DIMS2)                     # 16
PAD = (KERNEL_SIZE - 1) // 2                                   # 1 (padding='same')


# ---------------------------------------------------------------------------
# Single packed weight blob: one DMA instead of ~16.  Static row offsets.
# ---------------------------------------------------------------------------
def _build_layout():
    layout = {}
    row = [0]

    def add(name, nr, nc):
        layout[name] = (row[0], (nr, nc))
        row[0] += ((nr + 7) // 8) * 8          # keep every piece 8-row aligned

    for prefix, dims in (("cv1", DIMS1), ("cv2", DIMS2)):
        for i, (cin, cout, _l) in enumerate(dims):
            for k in range(KERNEL_SIZE):
                add(f"{prefix}_{i}_w{k}", cout, cin)   # per-tap (C_out, C_in)
            add(f"{prefix}_{i}_b", cout, 1)            # bias as a column
    fin = INPUT_SHAPE3[0]
    for j, fout in enumerate(LAYERS):
        add(f"net3_{j}_w", fin, fout)
        add(f"net3_{j}_b", 1, fout)
        fin = fout
    fin = FLAT_DIM
    for j, fout in enumerate(LAYERS_HEAD):
        add(f"head_{j}_w", fin, fout)
        add(f"head_{j}_b", 1, fout)
        fin = fout
    return layout, row[0]


LAYOUT, BLOB_ROWS = _build_layout()
BLOB_W = max(nc for _r, (_nr, nc) in LAYOUT.values())          # 32


def _ld(blob_ref, name):
    """Static (free) slice of the packed weight blob -> load."""
    r0, (nr, nc) = LAYOUT[name]
    return blob_ref[r0:r0 + nr, 0:nc]


# ---------------------------------------------------------------------------
# The fused kernel
# ---------------------------------------------------------------------------
def _conv_backbone(blob_ref, stage_ref, x_ref, prefix, dims, batch):
    """Run one conv backbone on a batch-folded (C_in, batch*L) layout."""
    f32 = jnp.float32
    h = None
    for i, (cin, cout, l_in) in enumerate(dims):
        n = batch * l_in
        # Stage the block input with a 1-lane halo on each side.  Halo lanes are
        # never valid data: the boundary masks below zero them before use.
        if i == 0:
            for b in range(batch):
                stage_ref[0:cin, 1 + b * l_in:1 + (b + 1) * l_in] = x_ref[b].astype(f32)
        else:
            stage_ref[0:cin, 1:1 + n] = h

        x_c = stage_ref[0:cin, 1:1 + n]          # tap d = 0
        x_m = stage_ref[0:cin, 0:n]              # tap d = -1  (x[:, j-1])
        x_p = stage_ref[0:cin, 2:2 + n]          # tap d = +1  (x[:, j+1])

        # Boundary masks (also handle the per-batch segment boundaries).
        pos = jax.lax.broadcasted_iota(jnp.int32, (1, n), 1) % l_in
        x_m = jnp.where(pos != 0, x_m, 0.0)
        x_p = jnp.where(pos != l_in - 1, x_p, 0.0)

        w0 = _ld(blob_ref, f"{prefix}_{i}_w0")
        w1 = _ld(blob_ref, f"{prefix}_{i}_w1")
        w2 = _ld(blob_ref, f"{prefix}_{i}_w2")
        bcol = _ld(blob_ref, f"{prefix}_{i}_b")  # (C_out, 1)

        acc = jnp.dot(w0, x_m, preferred_element_type=f32)
        acc = acc + jnp.dot(w1, x_c, preferred_element_type=f32)
        acc = acc + jnp.dot(w2, x_p, preferred_element_type=f32)
        acc = jnp.maximum(acc + bcol, 0.0)       # bias + ReLU

        # AvgPool1d(2, 2) as one matmul with a 0/0.5 constant; pooling pairs
        # never cross a batch segment, so the global pattern is already correct.
        r = jax.lax.broadcasted_iota(jnp.int32, (n, n // 2), 0)
        c = jax.lax.broadcasted_iota(jnp.int32, (n, n // 2), 1)
        pmat = jnp.where((r == 2 * c) | (r == 2 * c + 1), 0.5, 0.0).astype(f32)
        h = jnp.dot(acc, pmat, preferred_element_type=f32)     # (C_out, batch*l_in//2)
    return h


def _fused_forward_kernel(x1_ref, x2_ref, x3_ref, blob_ref, o_ref, stage_ref, flat_ref):
    f32 = jnp.float32
    batch = o_ref.shape[0]

    # --- conv backbone 1 (batch folded on lanes) ---
    h1 = _conv_backbone(blob_ref, stage_ref, x1_ref, "cv1", DIMS1, batch)  # (C1F, batch*L1F)
    for b in range(batch):
        for c in range(C1F):
            flat_ref[b:b + 1, c * L1F:(c + 1) * L1F] = h1[c:c + 1, b * L1F:(b + 1) * L1F]

    # --- conv backbone 2 ---
    h2 = _conv_backbone(blob_ref, stage_ref, x2_ref, "cv2", DIMS2, batch)  # (C2F, batch*L2F)
    for b in range(batch):
        for c in range(C2F):
            flat_ref[b:b + 1, N1 + c * L2F:N1 + (c + 1) * L2F] = \
                h2[c:c + 1, b * L2F:(b + 1) * L2F]

    # --- net3 branch (ReLU on every layer: get_fc_net last=False) ---
    y = x3_ref[...].astype(f32)
    for j in range(len(LAYERS)):
        w = _ld(blob_ref, f"net3_{j}_w")
        bb = _ld(blob_ref, f"net3_{j}_b")
        y = jnp.maximum(jnp.dot(y, w, preferred_element_type=f32) + bb, 0.0)
    flat_ref[:, N1 + N2:N1 + N2 + N3] = y

    # --- head: Linear+ReLU, Linear (get_fc_net last=True) ---
    z = flat_ref[...]
    n_head = len(LAYERS_HEAD)
    for j in range(n_head):
        w = _ld(blob_ref, f"head_{j}_w")
        bb = _ld(blob_ref, f"head_{j}_b")
        z = jnp.dot(z, w, preferred_element_type=f32) + bb
        if j < n_head - 1:
            z = jnp.maximum(z, 0.0)
    o_ref[...] = z.astype(o_ref.dtype)


# ---------------------------------------------------------------------------
# Wrapper: one pallas_call, 4 input DMAs (x1, x2, x3, weight blob)
# ---------------------------------------------------------------------------
@jax.jit
def forward(blob, x1, x2, x3):
    batch = x1.shape[0]
    out_dim = LAYERS_HEAD[-1]
    return pl.pallas_call(
        _fused_forward_kernel,
        out_shape=jax.ShapeDtypeStruct((batch, out_dim), jnp.float32),
        grid=(1,),
        in_specs=[
            pl.BlockSpec(x1.shape, lambda i: (0, 0, 0)),
            pl.BlockSpec(x2.shape, lambda i: (0, 0, 0)),
            pl.BlockSpec(x3.shape, lambda i: (0, 0)),
            pl.BlockSpec(blob.shape, lambda i: (0, 0)),
        ],
        out_specs=pl.BlockSpec((batch, out_dim), lambda i: (0, 0)),
        scratch_shapes=[
            pltpu.VMEM((MAX_CIN, batch * MAX_LIN + 2), jnp.float32),  # halo'd conv stage
            pltpu.VMEM((batch, FLAT_DIM), jnp.float32),               # flat concat buffer
        ],
    )(x1, x2, x3, blob)


# ---------------------------------------------------------------------------
# Parameters: init in PyTorch layouts, one-time pack into the weight blob
# ---------------------------------------------------------------------------
def init_params(key):
    """Native PyTorch layouts (Conv1d: (C_out, C_in, K); Linear: (F_out, F_in))."""
    def conv_backbone(key, input_shape, layers):
        n_in = input_shape[0]
        blocks = []
        for n_out in layers:
            key, kw, kb = jax.random.split(key, 3)
            blocks.append((0.1 * jax.random.normal(kw, (n_out, n_in, KERNEL_SIZE), jnp.float32),
                           0.1 * jax.random.normal(kb, (n_out,), jnp.float32)))
            n_in = n_out
        return key, blocks

    def fc(key, n_in, layers):
        out = []
        for n_out in layers:
            key, kw, kb = jax.random.split(key, 3)
            out.append((0.1 * jax.random.normal(kw, (n_out, n_in), jnp.float32),
                        0.1 * jax.random.normal(kb, (n_out,), jnp.float32)))
            n_in = n_out
        return key, out

    key, cv1 = conv_backbone(key, INPUT_SHAPE1, CONV_LAYERS1)
    key, cv2 = conv_backbone(key, INPUT_SHAPE2, CONV_LAYERS2)
    key, net3 = fc(key, INPUT_SHAPE3[0], LAYERS)
    key, head = fc(key, FLAT_DIM, LAYERS_HEAD)
    return {"cv1": cv1, "cv2": cv2, "net3": net3, "head": head}


def pack_params(params):
    """One-time re-layout of all weights into a single (BLOB_ROWS, 32) f32 blob."""
    blob = np.zeros((BLOB_ROWS, BLOB_W), np.float32)

    def put(name, arr):
        r0, (nr, nc) = LAYOUT[name]
        a = np.asarray(arr, np.float32)
        assert a.shape == (nr, nc), (name, a.shape, (nr, nc))
        blob[r0:r0 + nr, 0:nc] = a

    for prefix in ("cv1", "cv2"):
        for i, (w, b) in enumerate(params[prefix]):
            w = np.asarray(w)
            for k in range(KERNEL_SIZE):
                put(f"{prefix}_{i}_w{k}", w[:, :, k])          # (C_out, C_in) per tap
            put(f"{prefix}_{i}_b", np.asarray(b).reshape(-1, 1))
    for prefix in ("net3", "head"):
        for j, (w, b) in enumerate(params[prefix]):
            put(f"{prefix}_{j}_w", np.asarray(w).T)            # (F_in, F_out)
            put(f"{prefix}_{j}_b", np.asarray(b).reshape(1, -1))
    return jnp.asarray(blob)


# ---------------------------------------------------------------------------
if __name__ == "__main__":
    key = jax.random.PRNGKey(0)
    kp, k1, k2, k3 = jax.random.split(key, 4)

    params = init_params(kp)
    blob = pack_params(params)

    B = 2
    x1 = jax.random.normal(k1, (B,) + INPUT_SHAPE1, jnp.float32)   # (2, 4, 16)  NCL
    x2 = jax.random.normal(k2, (B,) + INPUT_SHAPE2, jnp.float32)   # (2, 6, 16)  NCL
    x3 = jax.random.normal(k3, (B,) + INPUT_SHAPE3, jnp.float32)   # (2, 8)

    out = forward(blob, x1, x2, x3)
    out = jax.block_until_ready(out)
    assert out.shape == (B, LAYERS_HEAD[-1]), out.shape
    assert bool(jnp.all(jnp.isfinite(out))), "non-finite output"
    print("KERNEL_OK")
</pallas_src>

<mosaic_0001>
module attributes {stable_mosaic.version = 11 : i64} {
  func.func @_fused_forward_kernel(%arg0: i32, %arg1: memref<2x4x16xf32, #tpu.memory_space<vmem>>, %arg2: memref<2x6x16xf32, #tpu.memory_space<vmem>>, %arg3: memref<2x8xf32, #tpu.memory_space<vmem>>, %arg4: memref<272x32xf32, #tpu.memory_space<vmem>>, %arg5: memref<2x4xf32, #tpu.memory_space<vmem>>, %arg6: memref<8x34xf32, #tpu.memory_space<vmem>>, %arg7: memref<2x112xf32, #tpu.memory_space<vmem>>) attributes {dimension_semantics = [#tpu.dimension_semantics<arbitrary>], iteration_bounds = array<i64: 1>, scalar_prefetch = 0 : i64, scratch_operands = 2 : i64, tpu.core_type = #tpu.core_type<tc>, window_params = [{pipeline_mode = #tpu.pipeline_mode<synchronous>, transform_indices = @transform_0, window_bounds = array<i64: 2, 4, 16>}, {pipeline_mode = #tpu.pipeline_mode<synchronous>, transform_indices = @transform_1, window_bounds = array<i64: 2, 6, 16>}, {pipeline_mode = #tpu.pipeline_mode<synchronous>, transform_indices = @transform_2, window_bounds = array<i64: 2, 8>}, {pipeline_mode = #tpu.pipeline_mode<synchronous>, transform_indices = @transform_3, window_bounds = array<i64: 272, 32>}, {pipeline_mode = #tpu.pipeline_mode<synchronous>, transform_indices = @transform_4, window_bounds = array<i64: 2, 4>}]} {
    %c0 = arith.constant 0 : index
    %c0_0 = arith.constant 0 : index
    %c0_1 = arith.constant 0 : index
    %0 = vector.load %arg1[%c0, %c0_0, %c0_1] : memref<2x4x16xf32, #tpu.memory_space<vmem>>, vector<1x4x16xf32>
    %1 = vector.shape_cast %0 : vector<1x4x16xf32> to vector<4x16xf32>
    %c0_2 = arith.constant 0 : index
    %c1 = arith.constant 1 : index
    %2 = vector.load %arg6[%c0_2, %c1] : memref<8x34xf32, #tpu.memory_space<vmem>>, vector<4x16xf32>
    tpu.vector_store %arg6[%c0_2, %c1], %1 {strides = array<i32>} : memref<8x34xf32, #tpu.memory_space<vmem>>, vector<4x16xf32>,
    %c1_3 = arith.constant 1 : index
    %c0_4 = arith.constant 0 : index
    %c0_5 = arith.constant 0 : index
    %3 = vector.load %arg1[%c1_3, %c0_4, %c0_5] : memref<2x4x16xf32, #tpu.memory_space<vmem>>, vector<1x4x16xf32>
    %4 = vector.shape_cast %3 : vector<1x4x16xf32> to vector<4x16xf32>
    %c0_6 = arith.constant 0 : index
    %c17 = arith.constant 17 : index
    %5 = vector.load %arg6[%c0_6, %c17] : memref<8x34xf32, #tpu.memory_space<vmem>>, vector<4x16xf32>
    tpu.vector_store %arg6[%c0_6, %c17], %4 {strides = array<i32>} : memref<8x34xf32, #tpu.memory_space<vmem>>, vector<4x16xf32>,
    %c0_7 = arith.constant 0 : index
    %c1_8 = arith.constant 1 : index
    %6 = vector.load %arg6[%c0_7, %c1_8] : memref<8x34xf32, #tpu.memory_space<vmem>>, vector<4x32xf32>
    %c0_9 = arith.constant 0 : index
    %c0_10 = arith.constant 0 : index
    %7 = vector.load %arg6[%c0_9, %c0_10] : memref<8x34xf32, #tpu.memory_space<vmem>>, vector<4x32xf32>
    %c0_11 = arith.constant 0 : index
    %c2 = arith.constant 2 : index
    %8 = vector.load %arg6[%c0_11, %c2] : memref<8x34xf32, #tpu.memory_space<vmem>>, vector<4x32xf32>
    %9 = tpu.iota {dimensions = array<i32: 1>} : vector<1x32xi32>
    %c16_i32 = arith.constant 16 : i32
    %c0_i32 = arith.constant 0 : i32
    %10 = arith.cmpi eq, %c16_i32, %c0_i32 : i32
    %c1_i32 = arith.constant 1 : i32
    %11 = arith.select %10, %c1_i32, %c16_i32 : i32
    %12 = vector.broadcast %11 : i32 to vector<1x32xi32>
    %13 = arith.remsi %9, %12 : vector<1x32xi32>
    %c0_i32_12 = arith.constant 0 : i32
    %14 = vector.broadcast %c0_i32_12 : i32 to vector<1x32xi32>
    %15 = arith.cmpi ne, %13, %14 : vector<1x32xi32>
    %c0_i32_13 = arith.constant 0 : i32
    %16 = vector.broadcast %c0_i32_13 : i32 to vector<1x32xi32>
    %17 = arith.cmpi slt, %13, %16 : vector<1x32xi32>
    %c0_i32_14 = arith.constant 0 : i32
    %18 = arith.cmpi slt, %11, %c0_i32_14 : i32
    %19 = vector.broadcast %18 : i1 to vector<1x32xi1>
    %20 = vector.broadcast %19 : vector<1x32xi1> to vector<1x32xi1>
    %21 = arith.xori %17, %20 : vector<1x32xi1>
    %22 = arith.andi %21, %15 : vector<1x32xi1>
    %23 = vector.broadcast %11 : i32 to vector<1x32xi32>
    %24 = arith.addi %13, %23 : vector<1x32xi32>
    %25 = arith.select %22, %24, %13 : vector<1x32xi1>, vector<1x32xi32>
    %c0_i32_15 = arith.constant 0 : i32
    %26 = vector.broadcast %c0_i32_15 : i32 to vector<1x32xi32>
    %27 = arith.cmpi ne, %25, %26 : vector<1x32xi32>
    %cst = arith.constant 0.000000e+00 : f32
    %28 = vector.shape_cast %27 : vector<1x32xi1> to vector<1x32xi1>
    %29 = vector.broadcast %28 : vector<1x32xi1> to vector<4x32xi1>
    %30 = vector.broadcast %cst : f32 to vector<4x32xf32>
    %31 = arith.select %29, %7, %30 : vector<4x32xi1>, vector<4x32xf32>
    %c15_i32 = arith.constant 15 : i32
    %32 = vector.broadcast %c15_i32 : i32 to vector<1x32xi32>
    %33 = arith.cmpi ne, %25, %32 : vector<1x32xi32>
    %cst_16 = arith.constant 0.000000e+00 : f32
    %34 = vector.shape_cast %33 : vector<1x32xi1> to vector<1x32xi1>
    %35 = vector.broadcast %34 : vector<1x32xi1> to vector<4x32xi1>
    %36 = vector.broadcast %cst_16 : f32 to vector<4x32xf32>
    %37 = arith.select %35, %8, %36 : vector<4x32xi1>, vector<4x32xf32>
    %c0_17 = arith.constant 0 : index
    %c0_18 = arith.constant 0 : index
    %38 = vector.load %arg4[%c0_17, %c0_18] : memref<272x32xf32, #tpu.memory_space<vmem>>, vector<8x4xf32>
    %c8 = arith.constant 8 : index
    %c0_19 = arith.constant 0 : index
    %39 = vector.load %arg4[%c8, %c0_19] : memref<272x32xf32, #tpu.memory_space<vmem>>, vector<8x4xf32>
    %c16 = arith.constant 16 : index
    %c0_20 = arith.constant 0 : index
    %40 = vector.load %arg4[%c16, %c0_20] : memref<272x32xf32, #tpu.memory_space<vmem>>, vector<8x4xf32>
    %c24 = arith.constant 24 : index
    %c0_21 = arith.constant 0 : index
    %41 = vector.load %arg4[%c24, %c0_21] : memref<272x32xf32, #tpu.memory_space<vmem>>, vector<8x1xf32>
    %cst_22 = arith.constant dense<0.000000e+00> : vector<8x32xf32>
    %42 = tpu.matmul %38, %31, %cst_22 {dimension_numbers = #tpu.dot_dimension_numbers<[1], [0], [0], [1], [0, 0, 1, 1], [], []>} : vector<8x4xf32>, vector<4x32xf32>, vector<8x32xf32> -> vector<8x32xf32>
    %cst_23 = arith.constant dense<0.000000e+00> : vector<8x32xf32>
    %43 = tpu.matmul %39, %6, %cst_23 {dimension_numbers = #tpu.dot_dimension_numbers<[1], [0], [0], [1], [0, 0, 1, 1], [], []>} : vector<8x4xf32>, vector<4x32xf32>, vector<8x32xf32> -> vector<8x32xf32>
    %44 = arith.addf %42, %43 : vector<8x32xf32>
    %cst_24 = arith.constant dense<0.000000e+00> : vector<8x32xf32>
    %45 = tpu.matmul %40, %37, %cst_24 {dimension_numbers = #tpu.dot_dimension_numbers<[1], [0], [0], [1], [0, 0, 1, 1], [], []>} : vector<8x4xf32>, vector<4x32xf32>, vector<8x32xf32> -> vector<8x32xf32>
    %46 = arith.addf %44, %45 : vector<8x32xf32>
    %47 = vector.broadcast %41 : vector<8x1xf32> to vector<8x32xf32>
    %48 = arith.addf %46, %47 : vector<8x32xf32>
    %cst_25 = arith.constant 0.000000e+00 : f32
    %49 = vector.broadcast %cst_25 : f32 to vector<8x32xf32>
    %50 = arith.maximumf %48, %49 : vector<8x32xf32>
    %51 = tpu.iota {dimensions = array<i32: 0>} : vector<32x16xi32>
    %52 = tpu.iota {dimensions = array<i32: 1>} : vector<32x16xi32>
    %c2_i32 = arith.constant 2 : i32
    %53 = vector.broadcast %c2_i32 : i32 to vector<32x16xi32>
    %54 = arith.muli %53, %52 : vector<32x16xi32>
    %55 = arith.cmpi eq, %51, %54 : vector<32x16xi32>
    %c2_i32_26 = arith.constant 2 : i32
    %56 = vector.broadcast %c2_i32_26 : i32 to vector<32x16xi32>
    %57 = arith.muli %56, %52 : vector<32x16xi32>
    %c1_i32_27 = arith.constant 1 : i32
    %58 = vector.broadcast %c1_i32_27 : i32 to vector<32x16xi32>
    %59 = arith.addi %57, %58 : vector<32x16xi32>
    %60 = arith.cmpi eq, %51, %59 : vector<32x16xi32>
    %61 = arith.ori %55, %60 : vector<32x16xi1>
    %cst_28 = arith.constant 5.000000e-01 : f32
    %cst_29 = arith.constant 0.000000e+00 : f32
    %62 = vector.broadcast %cst_28 : f32 to vector<32x16xf32>
    %63 = vector.broadcast %cst_29 : f32 to vector<32x16xf32>
    %64 = arith.select %61, %62, %63 : vector<32x16xi1>, vector<32x16xf32>
    %cst_30 = arith.constant dense<0.000000e+00> : vector<8x16xf32>
    %65 = tpu.matmul %50, %64, %cst_30 {dimension_numbers = #tpu.dot_dimension_numbers<[1], [0], [0], [1], [0, 0, 1, 1], [], []>} : vector<8x32xf32>, vector<32x16xf32>, vector<8x16xf32> -> vector<8x16xf32>
    %c0_31 = arith.constant 0 : index
    %c1_32 = arith.constant 1 : index
    %66 = vector.load %arg6[%c0_31, %c1_32] : memref<8x34xf32, #tpu.memory_space<vmem>>, vector<8x16xf32>
    tpu.vector_store %arg6[%c0_31, %c1_32], %65 {strides = array<i32>} : memref<8x34xf32, #tpu.memory_space<vmem>>, vector<8x16xf32>,
    %c0_33 = arith.constant 0 : index
    %c1_34 = arith.constant 1 : index
    %67 = vector.load %arg6[%c0_33, %c1_34] : memref<8x34xf32, #tpu.memory_space<vmem>>, vector<8x16xf32>
    %c0_35 = arith.constant 0 : index
    %c0_36 = arith.constant 0 : index
    %68 = vector.load %arg6[%c0_35, %c0_36] : memref<8x34xf32, #tpu.memory_space<vmem>>, vector<8x16xf32>
    %c0_37 = arith.constant 0 : index
    %c2_38 = arith.constant 2 : index
    %69 = vector.load %arg6[%c0_37, %c2_38] : memref<8x34xf32, #tpu.memory_space<vmem>>, vector<8x16xf32>
    %70 = tpu.iota {dimensions = array<i32: 1>} : vector<1x16xi32>
    %c8_i32 = arith.constant 8 : i32
    %c0_i32_39 = arith.constant 0 : i32
    %71 = arith.cmpi eq, %c8_i32, %c0_i32_39 : i32
    %c1_i32_40 = arith.constant 1 : i32
    %72 = arith.select %71, %c1_i32_40, %c8_i32 : i32
    %73 = vector.broadcast %72 : i32 to vector<1x16xi32>
    %74 = arith.remsi %70, %73 : vector<1x16xi32>
    %c0_i32_41 = arith.constant 0 : i32
    %75 = vector.broadcast %c0_i32_41 : i32 to vector<1x16xi32>
    %76 = arith.cmpi ne, %74, %75 : vector<1x16xi32>
    %c0_i32_42 = arith.constant 0 : i32
    %77 = vector.broadcast %c0_i32_42 : i32 to vector<1x16xi32>
    %78 = arith.cmpi slt, %74, %77 : vector<1x16xi32>
    %c0_i32_43 = arith.constant 0 : i32
    %79 = arith.cmpi slt, %72, %c0_i32_43 : i32
    %80 = vector.broadcast %79 : i1 to vector<1x16xi1>
    %81 = vector.broadcast %80 : vector<1x16xi1> to vector<1x16xi1>
    %82 = arith.xori %78, %81 : vector<1x16xi1>
    %83 = arith.andi %82, %76 : vector<1x16xi1>
    %84 = vector.broadcast %72 : i32 to vector<1x16xi32>
    %85 = arith.addi %74, %84 : vector<1x16xi32>
    %86 = arith.select %83, %85, %74 : vector<1x16xi1>, vector<1x16xi32>
    %c0_i32_44 = arith.constant 0 : i32
    %87 = vector.broadcast %c0_i32_44 : i32 to vector<1x16xi32>
    %88 = arith.cmpi ne, %86, %87 : vector<1x16xi32>
    %cst_45 = arith.constant 0.000000e+00 : f32
    %89 = vector.shape_cast %88 : vector<1x16xi1> to vector<1x16xi1>
    %90 = vector.broadcast %89 : vector<1x16xi1> to vector<8x16xi1>
    %91 = vector.broadcast %cst_45 : f32 to vector<8x16xf32>
    %92 = arith.select %90, %68, %91 : vector<8x16xi1>, vector<8x16xf32>
    %c7_i32 = arith.constant 7 : i32
    %93 = vector.broadcast %c7_i32 : i32 to vector<1x16xi32>
    %94 = arith.cmpi ne, %86, %93 : vector<1x16xi32>
    %cst_46 = arith.constant 0.000000e+00 : f32
    %95 = vector.shape_cast %94 : vector<1x16xi1> to vector<1x16xi1>
    %96 = vector.broadcast %95 : vector<1x16xi1> to vector<8x16xi1>
    %97 = vector.broadcast %cst_46 : f32 to vector<8x16xf32>
    %98 = arith.select %96, %69, %97 : vector<8x16xi1>, vector<8x16xf32>
    %c32 = arith.constant 32 : index
    %c0_47 = arith.constant 0 : index
    %99 = vector.load %arg4[%c32, %c0_47] : memref<272x32xf32, #tpu.memory_space<vmem>>, vector<8x8xf32>
    %c40 = arith.constant 40 : index
    %c0_48 = arith.constant 0 : index
    %100 = vector.load %arg4[%c40, %c0_48] : memref<272x32xf32, #tpu.memory_space<vmem>>, vector<8x8xf32>
    %c48 = arith.constant 48 : index
    %c0_49 = arith.constant 0 : index
    %101 = vector.load %arg4[%c48, %c0_49] : memref<272x32xf32, #tpu.memory_space<vmem>>, vector<8x8xf32>
    %c56 = arith.constant 56 : index
    %c0_50 = arith.constant 0 : index
    %102 = vector.load %arg4[%c56, %c0_50] : memref<272x32xf32, #tpu.memory_space<vmem>>, vector<8x1xf32>
    %cst_51 = arith.constant dense<0.000000e+00> : vector<8x16xf32>
    %103 = tpu.matmul %99, %92, %cst_51 {dimension_numbers = #tpu.dot_dimension_numbers<[1], [0], [0], [1], [0, 0, 1, 1], [], []>} : vector<8x8xf32>, vector<8x16xf32>, vector<8x16xf32> -> vector<8x16xf32>
    %cst_52 = arith.constant dense<0.000000e+00> : vector<8x16xf32>
    %104 = tpu.matmul %100, %67, %cst_52 {dimension_numbers = #tpu.dot_dimension_numbers<[1], [0], [0], [1], [0, 0, 1, 1], [], []>} : vector<8x8xf32>, vector<8x16xf32>, vector<8x16xf32> -> vector<8x16xf32>
    %105 = arith.addf %103, %104 : vector<8x16xf32>
    %cst_53 = arith.constant dense<0.000000e+00> : vector<8x16xf32>
    %106 = tpu.matmul %101, %98, %cst_53 {dimension_numbers = #tpu.dot_dimension_numbers<[1], [0], [0], [1], [0, 0, 1, 1], [], []>} : vector<8x8xf32>, vector<8x16xf32>, vector<8x16xf32> -> vector<8x16xf32>
    %107 = arith.addf %105, %106 : vector<8x16xf32>
    %108 = vector.broadcast %102 : vector<8x1xf32> to vector<8x16xf32>
    %109 = arith.addf %107, %108 : vector<8x16xf32>
    %cst_54 = arith.constant 0.000000e+00 : f32
    %110 = vector.broadcast %cst_54 : f32 to vector<8x16xf32>
    %111 = arith.maximumf %109, %110 : vector<8x16xf32>
    %112 = tpu.iota {dimensions = array<i32: 0>} : vector<16x8xi32>
    %113 = tpu.iota {dimensions = array<i32: 1>} : vector<16x8xi32>
    %c2_i32_55 = arith.constant 2 : i32
    %114 = vector.broadcast %c2_i32_55 : i32 to vector<16x8xi32>
    %115 = arith.muli %114, %113 : vector<16x8xi32>
    %116 = arith.cmpi eq, %112, %115 : vector<16x8xi32>
    %c2_i32_56 = arith.constant 2 : i32
    %117 = vector.broadcast %c2_i32_56 : i32 to vector<16x8xi32>
    %118 = arith.muli %117, %113 : vector<16x8xi32>
    %c1_i32_57 = arith.constant 1 : i32
    %119 = vector.broadcast %c1_i32_57 : i32 to vector<16x8xi32>
    %120 = arith.addi %118, %119 : vector<16x8xi32>
    %121 = arith.cmpi eq, %112, %120 : vector<16x8xi32>
    %122 = arith.ori %116, %121 : vector<16x8xi1>
    %cst_58 = arith.constant 5.000000e-01 : f32
    %cst_59 = arith.constant 0.000000e+00 : f32
    %123 = vector.broadcast %cst_58 : f32 to vector<16x8xf32>
    %124 = vector.broadcast %cst_59 : f32 to vector<16x8xf32>
    %125 = arith.select %122, %123, %124 : vector<16x8xi1>, vector<16x8xf32>
    %cst_60 = arith.constant dense<0.000000e+00> : vector<8x8xf32>
    %126 = tpu.matmul %111, %125, %cst_60 {dimension_numbers = #tpu.dot_dimension_numbers<[1], [0], [0], [1], [0, 0, 1, 1], [], []>} : vector<8x16xf32>, vector<16x8xf32>, vector<8x8xf32> -> vector<8x8xf32>
    %127 = vector.extract_strided_slice %126 {offsets = [0, 0], sizes = [1, 4], strides = [1, 1]} : vector<8x8xf32> to vector<1x4xf32>
    %c0_61 = arith.constant 0 : index
    %c0_62 = arith.constant 0 : index
    %128 = vector.load %arg7[%c0_61, %c0_62] : memref<2x112xf32, #tpu.memory_space<vmem>>, vector<1x4xf32>
    tpu.vector_store %arg7[%c0_61, %c0_62], %127 {strides = array<i32>} : memref<2x112xf32, #tpu.memory_space<vmem>>, vector<1x4xf32>,
    %129 = vector.extract_strided_slice %126 {offsets = [1, 0], sizes = [1, 4], strides = [1, 1]} : vector<8x8xf32> to vector<1x4xf32>
    %c0_63 = arith.constant 0 : index
    %c4 = arith.constant 4 : index
    %130 = vector.load %arg7[%c0_63, %c4] : memref<2x112xf32, #tpu.memory_space<vmem>>, vector<1x4xf32>
    tpu.vector_store %arg7[%c0_63, %c4], %129 {strides = array<i32>} : memref<2x112xf32, #tpu.memory_space<vmem>>, vector<1x4xf32>,
    %131 = vector.extract_strided_slice %126 {offsets = [2, 0], sizes = [1, 4], strides = [1, 1]} : vector<8x8xf32> to vector<1x4xf32>
    %c0_64 = arith.constant 0 : index
    %c8_65 = arith.constant 8 : index
    %132 = vector.load %arg7[%c0_64, %c8_65] : memref<2x112xf32, #tpu.memory_space<vmem>>, vector<1x4xf32>
    tpu.vector_store %arg7[%c0_64, %c8_65], %131 {strides = array<i32>} : memref<2x112xf32, #tpu.memory_space<vmem>>, vector<1x4xf32>,
    %133 = vector.extract_strided_slice %126 {offsets = [3, 0], sizes = [1, 4], strides = [1, 1]} : vector<8x8xf32> to vector<1x4xf32>
    %c0_66 = arith.constant 0 : index
    %c12 = arith.constant 12 : index
    %134 = vector.load %arg7[%c0_66, %c12] : memref<2x112xf32, #tpu.memory_space<vmem>>, vector<1x4xf32>
    tpu.vector_store %arg7[%c0_66, %c12], %133 {strides = array<i32>} : memref<2x112xf32, #tpu.memory_space<vmem>>, vector<1x4xf32>,
    %135 = vector.extract_strided_slice %126 {offsets = [4, 0], sizes = [1, 4], strides = [1, 1]} : vector<8x8xf32> to vector<1x4xf32>
    %c0_67 = arith.constant 0 : index
    %c16_68 = arith.constant 16 : index
    %136 = vector.load %arg7[%c0_67, %c16_68] : memref<2x112xf32, #tpu.memory_space<vmem>>, vector<1x4xf32>
    tpu.vector_store %arg7[%c0_67, %c16_68], %135 {strides = array<i32>} : memref<2x112xf32, #tpu.memory_space<vmem>>, vector<1x4xf32>,
    %137 = vector.extract_strided_slice %126 {offsets = [5, 0], sizes = [1, 4], strides = [1, 1]} : vector<8x8xf32> to vector<1x4xf32>
    %c0_69 = arith.constant 0 : index
    %c20 = arith.constant 20 : index
    %138 = vector.load %arg7[%c0_69, %c20] : memref<2x112xf32, #tpu.memory_space<vmem>>, vector<1x4xf32>
    tpu.vector_store %arg7[%c0_69, %c20], %137 {strides = array<i32>} : memref<2x112xf32, #tpu.memory_space<vmem>>, vector<1x4xf32>,
    %139 = vector.extract_strided_slice %126 {offsets = [6, 0], sizes = [1, 4], strides = [1, 1]} : vector<8x8xf32> to vector<1x4xf32>
    %c0_70 = arith.constant 0 : index
    %c24_71 = arith.constant 24 : index
    %140 = vector.load %arg7[%c0_70, %c24_71] : memref<2x112xf32, #tpu.memory_space<vmem>>, vector<1x4xf32>
    tpu.vector_store %arg7[%c0_70, %c24_71], %139 {strides = array<i32>} : memref<2x112xf32, #tpu.memory_space<vmem>>, vector<1x4xf32>,
    %141 = vector.extract_strided_slice %126 {offsets = [7, 0], sizes = [1, 4], strides = [1, 1]} : vector<8x8xf32> to vector<1x4xf32>
    %c0_72 = arith.constant 0 : index
    %c28 = arith.constant 28 : index
    %142 = vector.load %arg7[%c0_72, %c28] : memref<2x112xf32, #tpu.memory_space<vmem>>, vector<1x4xf32>
    tpu.vector_store %arg7[%c0_72, %c28], %141 {strides = array<i32>} : memref<2x112xf32, #tpu.memory_space<vmem>>, vector<1x4xf32>,
    %143 = vector.extract_strided_slice %126 {offsets = [0, 4], sizes = [1, 4], strides = [1, 1]} : vector<8x8xf32> to vector<1x4xf32>
    %c1_73 = arith.constant 1 : index
    %c0_74 = arith.constant 0 : index
    %144 = vector.load %arg7[%c1_73, %c0_74] : memref<2x112xf32, #tpu.memory_space<vmem>>, vector<1x4xf32>
    tpu.vector_store %arg7[%c1_73, %c0_74], %143 {strides = array<i32>} : memref<2x112xf32, #tpu.memory_space<vmem>>, vector<1x4xf32>,
    %145 = vector.extract_strided_slice %126 {offsets = [1, 4], sizes = [1, 4], strides = [1, 1]} : vector<8x8xf32> to vector<1x4xf32>
    %c1_75 = arith.constant 1 : index
    %c4_76 = arith.constant 4 : index
    %146 = vector.load %arg7[%c1_75, %c4_76] : memref<2x112xf32, #tpu.memory_space<vmem>>, vector<1x4xf32>
    tpu.vector_store %arg7[%c1_75, %c4_76], %145 {strides = array<i32>} : memref<2x112xf32, #tpu.memory_space<vmem>>, vector<1x4xf32>,
    %147 = vector.extract_strided_slice %126 {offsets = [2, 4], sizes = [1, 4], strides = [1, 1]} : vector<8x8xf32> to vector<1x4xf32>
    %c1_77 = arith.constant 1 : index
    %c8_78 = arith.constant 8 : index
    %148 = vector.load %arg7[%c1_77, %c8_78] : memref<2x112xf32, #tpu.memory_space<vmem>>, vector<1x4xf32>
    tpu.vector_store %arg7[%c1_77, %c8_78], %147 {strides = array<i32>} : memref<2x112xf32, #tpu.memory_space<vmem>>, vector<1x4xf32>,
    %149 = vector.extract_strided_slice %126 {offsets = [3, 4], sizes = [1, 4], strides = [1, 1]} : vector<8x8xf32> to vector<1x4xf32>
    %c1_79 = arith.constant 1 : index
    %c12_80 = arith.constant 12 : index
    %150 = vector.load %arg7[%c1_79, %c12_80] : memref<2x112xf32, #tpu.memory_space<vmem>>, vector<1x4xf32>
    tpu.vector_store %arg7[%c1_79, %c12_80], %149 {strides = array<i32>} : memref<2x112xf32, #tpu.memory_space<vmem>>, vector<1x4xf32>,
    %151 = vector.extract_strided_slice %126 {offsets = [4, 4], sizes = [1, 4], strides = [1, 1]} : vector<8x8xf32> to vector<1x4xf32>
    %c1_81 = arith.constant 1 : index
    %c16_82 = arith.constant 16 : index
    %152 = vector.load %arg7[%c1_81, %c16_82] : memref<2x112xf32, #tpu.memory_space<vmem>>, vector<1x4xf32>
    tpu.vector_store %arg7[%c1_81, %c16_82], %151 {strides = array<i32>} : memref<2x112xf32, #tpu.memory_space<vmem>>, vector<1x4xf32>,
    %153 = vector.extract_strided_slice %126 {offsets = [5, 4], sizes = [1, 4], strides = [1, 1]} : vector<8x8xf32> to vector<1x4xf32>
    %c1_83 = arith.constant 1 : index
    %c20_84 = arith.constant 20 : index
    %154 = vector.load %arg7[%c1_83, %c20_84] : memref<2x112xf32, #tpu.memory_space<vmem>>, vector<1x4xf32>
    tpu.vector_store %arg7[%c1_83, %c20_84], %153 {strides = array<i32>} : memref<2x112xf32, #tpu.memory_space<vmem>>, vector<1x4xf32>,
    %155 = vector.extract_strided_slice %126 {offsets = [6, 4], sizes = [1, 4], strides = [1, 1]} : vector<8x8xf32> to vector<1x4xf32>
    %c1_85 = arith.constant 1 : index
    %c24_86 = arith.constant 24 : index
    %156 = vector.load %arg7[%c1_85, %c24_86] : memref<2x112xf32, #tpu.memory_space<vmem>>, vector<1x4xf32>
    tpu.vector_store %arg7[%c1_85, %c24_86], %155 {strides = array<i32>} : memref<2x112xf32, #tpu.memory_space<vmem>>, vector<1x4xf32>,
    %157 = vector.extract_strided_slice %126 {offsets = [7, 4], sizes = [1, 4], strides = [1, 1]} : vector<8x8xf32> to vector<1x4xf32>
    %c1_87 = arith.constant 1 : index
    %c28_88 = arith.constant 28 : index
    %158 = vector.load %arg7[%c1_87, %c28_88] : memref<2x112xf32, #tpu.memory_space<vmem>>, vector<1x4xf32>
    tpu.vector_store %arg7[%c1_87, %c28_88], %157 {strides = array<i32>} : memref<2x112xf32, #tpu.memory_space<vmem>>, vector<1x4xf32>,
    %c0_89 = arith.constant 0 : index
    %c0_90 = arith.constant 0 : index
    %c0_91 = arith.constant 0 : index
    %159 = vector.load %arg2[%c0_89, %c0_90, %c0_91] : memref<2x6x16xf32, #tpu.memory_space<vmem>>, vector<1x6x16xf32>
    %160 = vector.shape_cast %159 : vector<1x6x16xf32> to vector<6x16xf32>
    %c0_92 = arith.constant 0 : index
    %c1_93 = arith.constant 1 : index
    %161 = vector.load %arg6[%c0_92, %c1_93] : memref<8x34xf32, #tpu.memory_space<vmem>>, vector<6x16xf32>
    tpu.vector_store %arg6[%c0_92, %c1_93], %160 {strides = array<i32>} : memref<8x34xf32, #tpu.memory_space<vmem>>, vector<6x16xf32>,
    %c1_94 = arith.constant 1 : index
    %c0_95 = arith.constant 0 : index
    %c0_96 = arith.constant 0 : index
    %162 = vector.load %arg2[%c1_94, %c0_95, %c0_96] : memref<2x6x16xf32, #tpu.memory_space<vmem>>, vector<1x6x16xf32>
    %163 = vector.shape_cast %162 : vector<1x6x16xf32> to vector<6x16xf32>
    %c0_97 = arith.constant 0 : index
    %c17_98 = arith.constant 17 : index
    %164 = vector.load %arg6[%c0_97, %c17_98] : memref<8x34xf32, #tpu.memory_space<vmem>>, vector<6x16xf32>
    tpu.vector_store %arg6[%c0_97, %c17_98], %163 {strides = array<i32>} : memref<8x34xf32, #tpu.memory_space<vmem>>, vector<6x16xf32>,
    %c0_99 = arith.constant 0 : index
    %c1_100 = arith.constant 1 : index
    %165 = vector.load %arg6[%c0_99, %c1_100] : memref<8x34xf32, #tpu.memory_space<vmem>>, vector<6x32xf32>
    %c0_101 = arith.constant 0 : index
    %c0_102 = arith.constant 0 : index
    %166 = vector.load %arg6[%c0_101, %c0_102] : memref<8x34xf32, #tpu.memory_space<vmem>>, vector<6x32xf32>
    %c0_103 = arith.constant 0 : index
    %c2_104 = arith.constant 2 : index
    %167 = vector.load %arg6[%c0_103, %c2_104] : memref<8x34xf32, #tpu.memory_space<vmem>>, vector<6x32xf32>
    %168 = tpu.iota {dimensions = array<i32: 1>} : vector<1x32xi32>
    %c16_i32_105 = arith.constant 16 : i32
    %c0_i32_106 = arith.constant 0 : i32
    %169 = arith.cmpi eq, %c16_i32_105, %c0_i32_106 : i32
    %c1_i32_107 = arith.constant 1 : i32
    %170 = arith.select %169, %c1_i32_107, %c16_i32_105 : i32
    %171 = vector.broadcast %170 : i32 to vector<1x32xi32>
    %172 = arith.remsi %168, %171 : vector<1x32xi32>
    %c0_i32_108 = arith.constant 0 : i32
    %173 = vector.broadcast %c0_i32_108 : i32 to vector<1x32xi32>
    %174 = arith.cmpi ne, %172, %173 : vector<1x32xi32>
    %c0_i32_109 = arith.constant 0 : i32
    %175 = vector.broadcast %c0_i32_109 : i32 to vector<1x32xi32>
    %176 = arith.cmpi slt, %172, %175 : vector<1x32xi32>
    %c0_i32_110 = arith.constant 0 : i32
    %177 = arith.cmpi slt, %170, %c0_i32_110 : i32
    %178 = vector.broadcast %177 : i1 to vector<1x32xi1>
    %179 = vector.broadcast %178 : vector<1x32xi1> to vector<1x32xi1>
    %180 = arith.xori %176, %179 : vector<1x32xi1>
    %181 = arith.andi %180, %174 : vector<1x32xi1>
    %182 = vector.broadcast %170 : i32 to vector<1x32xi32>
    %183 = arith.addi %172, %182 : vector<1x32xi32>
    %184 = arith.select %181, %183, %172 : vector<1x32xi1>, vector<1x32xi32>
    %c0_i32_111 = arith.constant 0 : i32
    %185 = vector.broadcast %c0_i32_111 : i32 to vector<1x32xi32>
    %186 = arith.cmpi ne, %184, %185 : vector<1x32xi32>
    %cst_112 = arith.constant 0.000000e+00 : f32
    %187 = vector.shape_cast %186 : vector<1x32xi1> to vector<1x32xi1>
    %188 = vector.broadcast %187 : vector<1x32xi1> to vector<6x32xi1>
    %189 = vector.broadcast %cst_112 : f32 to vector<6x32xf32>
    %190 = arith.select %188, %166, %189 : vector<6x32xi1>, vector<6x32xf32>
    %c15_i32_113 = arith.constant 15 : i32
    %191 = vector.broadcast %c15_i32_113 : i32 to vector<1x32xi32>
    %192 = arith.cmpi ne, %184, %191 : vector<1x32xi32>
    %cst_114 = arith.constant 0.000000e+00 : f32
    %193 = vector.shape_cast %192 : vector<1x32xi1> to vector<1x32xi1>
    %194 = vector.broadcast %193 : vector<1x32xi1> to vector<6x32xi1>
    %195 = vector.broadcast %cst_114 : f32 to vector<6x32xf32>
    %196 = arith.select %194, %167, %195 : vector<6x32xi1>, vector<6x32xf32>
    %c64 = arith.constant 64 : index
    %c0_115 = arith.constant 0 : index
    %197 = vector.load %arg4[%c64, %c0_115] : memref<272x32xf32, #tpu.memory_space<vmem>>, vector<8x6xf32>
    %c72 = arith.constant 72 : index
    %c0_116 = arith.constant 0 : index
    %198 = vector.load %arg4[%c72, %c0_116] : memref<272x32xf32, #tpu.memory_space<vmem>>, vector<8x6xf32>
    %c80 = arith.constant 80 : index
    %c0_117 = arith.constant 0 : index
    %199 = vector.load %arg4[%c80, %c0_117] : memref<272x32xf32, #tpu.memory_space<vmem>>, vector<8x6xf32>
    %c88 = arith.constant 88 : index
    %c0_118 = arith.constant 0 : index
    %200 = vector.load %arg4[%c88, %c0_118] : memref<272x32xf32, #tpu.memory_space<vmem>>, vector<8x1xf32>
    %cst_119 = arith.constant dense<0.000000e+00> : vector<8x32xf32>
    %201 = tpu.matmul %197, %190, %cst_119 {dimension_numbers = #tpu.dot_dimension_numbers<[1], [0], [0], [1], [0, 0, 1, 1], [], []>} : vector<8x6xf32>, vector<6x32xf32>, vector<8x32xf32> -> vector<8x32xf32>
    %cst_120 = arith.constant dense<0.000000e+00> : vector<8x32xf32>
    %202 = tpu.matmul %198, %165, %cst_120 {dimension_numbers = #tpu.dot_dimension_numbers<[1], [0], [0], [1], [0, 0, 1, 1], [], []>} : vector<8x6xf32>, vector<6x32xf32>, vector<8x32xf32> -> vector<8x32xf32>
    %203 = arith.addf %201, %202 : vector<8x32xf32>
    %cst_121 = arith.constant dense<0.000000e+00> : vector<8x32xf32>
    %204 = tpu.matmul %199, %196, %cst_121 {dimension_numbers = #tpu.dot_dimension_numbers<[1], [0], [0], [1], [0, 0, 1, 1], [], []>} : vector<8x6xf32>, vector<6x32xf32>, vector<8x32xf32> -> vector<8x32xf32>
    %205 = arith.addf %203, %204 : vector<8x32xf32>
    %206 = vector.broadcast %200 : vector<8x1xf32> to vector<8x32xf32>
    %207 = arith.addf %205, %206 : vector<8x32xf32>
    %cst_122 = arith.constant 0.000000e+00 : f32
    %208 = vector.broadcast %cst_122 : f32 to vector<8x32xf32>
    %209 = arith.maximumf %207, %208 : vector<8x32xf32>
    %210 = tpu.iota {dimensions = array<i32: 0>} : vector<32x16xi32>
    %211 = tpu.iota {dimensions = array<i32: 1>} : vector<32x16xi32>
    %c2_i32_123 = arith.constant 2 : i32
    %212 = vector.broadcast %c2_i32_123 : i32 to vector<32x16xi32>
    %213 = arith.muli %212, %211 : vector<32x16xi32>
    %214 = arith.cmpi eq, %210, %213 : vector<32x16xi32>
    %c2_i32_124 = arith.constant 2 : i32
    %215 = vector.broadcast %c2_i32_124 : i32 to vector<32x16xi32>
    %216 = arith.muli %215, %211 : vector<32x16xi32>
    %c1_i32_125 = arith.constant 1 : i32
    %217 = vector.broadcast %c1_i32_125 : i32 to vector<32x16xi32>
    %218 = arith.addi %216, %217 : vector<32x16xi32>
    %219 = arith.cmpi eq, %210, %218 : vector<32x16xi32>
    %220 = arith.ori %214, %219 : vector<32x16xi1>
    %cst_126 = arith.constant 5.000000e-01 : f32
    %cst_127 = arith.constant 0.000000e+00 : f32
    %221 = vector.broadcast %cst_126 : f32 to vector<32x16xf32>
    %222 = vector.broadcast %cst_127 : f32 to vector<32x16xf32>
    %223 = arith.select %220, %221, %222 : vector<32x16xi1>, vector<32x16xf32>
    %cst_128 = arith.constant dense<0.000000e+00> : vector<8x16xf32>
    %224 = tpu.matmul %209, %223, %cst_128 {dimension_numbers = #tpu.dot_dimension_numbers<[1], [0], [0], [1], [0, 0, 1, 1], [], []>} : vector<8x32xf32>, vector<32x16xf32>, vector<8x16xf32> -> vector<8x16xf32>
    %225 = vector.extract_strided_slice %224 {offsets = [0, 0], sizes = [1, 8], strides = [1, 1]} : vector<8x16xf32> to vector<1x8xf32>
    %c0_129 = arith.constant 0 : index
    %c32_130 = arith.constant 32 : index
    %226 = vector.load %arg7[%c0_129, %c32_130] : memref<2x112xf32, #tpu.memory_space<vmem>>, vector<1x8xf32>
    tpu.vector_store %arg7[%c0_129, %c32_130], %225 {strides = array<i32>} : memref<2x112xf32, #tpu.memory_space<vmem>>, vector<1x8xf32>,
    %227 = vector.extract_strided_slice %224 {offsets = [1, 0], sizes = [1, 8], strides = [1, 1]} : vector<8x16xf32> to vector<1x8xf32>
    %c0_131 = arith.constant 0 : index
    %c40_132 = arith.constant 40 : index
    %228 = vector.load %arg7[%c0_131, %c40_132] : memref<2x112xf32, #tpu.memory_space<vmem>>, vector<1x8xf32>
    tpu.vector_store %arg7[%c0_131, %c40_132], %227 {strides = array<i32>} : memref<2x112xf32, #tpu.memory_space<vmem>>, vector<1x8xf32>,
    %229 = vector.extract_strided_slice %224 {offsets = [2, 0], sizes = [1, 8], strides = [1, 1]} : vector<8x16xf32> to vector<1x8xf32>
    %c0_133 = arith.constant 0 : index
    %c48_134 = arith.constant 48 : index
    %230 = vector.load %arg7[%c0_133, %c48_134] : memref<2x112xf32, #tpu.memory_space<vmem>>, vector<1x8xf32>
    tpu.vector_store %arg7[%c0_133, %c48_134], %229 {strides = array<i32>} : memref<2x112xf32, #tpu.memory_space<vmem>>, vector<1x8xf32>,
    %231 = vector.extract_strided_slice %224 {offsets = [3, 0], sizes = [1, 8], strides = [1, 1]} : vector<8x16xf32> to vector<1x8xf32>
    %c0_135 = arith.constant 0 : index
    %c56_136 = arith.constant 56 : index
    %232 = vector.load %arg7[%c0_135, %c56_136] : memref<2x112xf32, #tpu.memory_space<vmem>>, vector<1x8xf32>
    tpu.vector_store %arg7[%c0_135, %c56_136], %231 {strides = array<i32>} : memref<2x112xf32, #tpu.memory_space<vmem>>, vector<1x8xf32>,
    %233 = vector.extract_strided_slice %224 {offsets = [4, 0], sizes = [1, 8], strides = [1, 1]} : vector<8x16xf32> to vector<1x8xf32>
    %c0_137 = arith.constant 0 : index
    %c64_138 = arith.constant 64 : index
    %234 = vector.load %arg7[%c0_137, %c64_138] : memref<2x112xf32, #tpu.memory_space<vmem>>, vector<1x8xf32>
    tpu.vector_store %arg7[%c0_137, %c64_138], %233 {strides = array<i32>} : memref<2x112xf32, #tpu.memory_space<vmem>>, vector<1x8xf32>,
    %235 = vector.extract_strided_slice %224 {offsets = [5, 0], sizes = [1, 8], strides = [1, 1]} : vector<8x16xf32> to vector<1x8xf32>
    %c0_139 = arith.constant 0 : index
    %c72_140 = arith.constant 72 : index
    %236 = vector.load %arg7[%c0_139, %c72_140] : memref<2x112xf32, #tpu.memory_space<vmem>>, vector<1x8xf32>
    tpu.vector_store %arg7[%c0_139, %c72_140], %235 {strides = array<i32>} : memref<2x112xf32, #tpu.memory_space<vmem>>, vector<1x8xf32>,
    %237 = vector.extract_strided_slice %224 {offsets = [6, 0], sizes = [1, 8], strides = [1, 1]} : vector<8x16xf32> to vector<1x8xf32>
    %c0_141 = arith.constant 0 : index
    %c80_142 = arith.constant 80 : index
    %238 = vector.load %arg7[%c0_141, %c80_142] : memref<2x112xf32, #tpu.memory_space<vmem>>, vector<1x8xf32>
    tpu.vector_store %arg7[%c0_141, %c80_142], %237 {strides = array<i32>} : memref<2x112xf32, #tpu.memory_space<vmem>>, vector<1x8xf32>,
    %239 = vector.extract_strided_slice %224 {offsets = [7, 0], sizes = [1, 8], strides = [1, 1]} : vector<8x16xf32> to vector<1x8xf32>
    %c0_143 = arith.constant 0 : index
    %c88_144 = arith.constant 88 : index
    %240 = vector.load %arg7[%c0_143, %c88_144] : memref<2x112xf32, #tpu.memory_space<vmem>>, vector<1x8xf32>
    tpu.vector_store %arg7[%c0_143, %c88_144], %239 {strides = array<i32>} : memref<2x112xf32, #tpu.memory_space<vmem>>, vector<1x8xf32>,
    %241 = vector.extract_strided_slice %224 {offsets = [0, 8], sizes = [1, 8], strides = [1, 1]} : vector<8x16xf32> to vector<1x8xf32>
    %c1_145 = arith.constant 1 : index
    %c32_146 = arith.constant 32 : index
    %242 = vector.load %arg7[%c1_145, %c32_146] : memref<2x112xf32, #tpu.memory_space<vmem>>, vector<1x8xf32>
    tpu.vector_store %arg7[%c1_145, %c32_146], %241 {strides = array<i32>} : memref<2x112xf32, #tpu.memory_space<vmem>>, vector<1x8xf32>,
    %243 = vector.extract_strided_slice %224 {offsets = [1, 8], sizes = [1, 8], strides = [1, 1]} : vector<8x16xf32> to vector<1x8xf32>
    %c1_147 = arith.constant 1 : index
    %c40_148 = arith.constant 40 : index
    %244 = vector.load %arg7[%c1_147, %c40_148] : memref<2x112xf32, #tpu.memory_space<vmem>>, vector<1x8xf32>
    tpu.vector_store %arg7[%c1_147, %c40_148], %243 {strides = array<i32>} : memref<2x112xf32, #tpu.memory_space<vmem>>, vector<1x8xf32>,
    %245 = vector.extract_strided_slice %224 {offsets = [2, 8], sizes = [1, 8], strides = [1, 1]} : vector<8x16xf32> to vector<1x8xf32>
    %c1_149 = arith.constant 1 : index
    %c48_150 = arith.constant 48 : index
    %246 = vector.load %arg7[%c1_149, %c48_150] : memref<2x112xf32, #tpu.memory_space<vmem>>, vector<1x8xf32>
    tpu.vector_store %arg7[%c1_149, %c48_150], %245 {strides = array<i32>} : memref<2x112xf32, #tpu.memory_space<vmem>>, vector<1x8xf32>,
    %247 = vector.extract_strided_slice %224 {offsets = [3, 8], sizes = [1, 8], strides = [1, 1]} : vector<8x16xf32> to vector<1x8xf32>
    %c1_151 = arith.constant 1 : index
    %c56_152 = arith.constant 56 : index
    %248 = vector.load %arg7[%c1_151, %c56_152] : memref<2x112xf32, #tpu.memory_space<vmem>>, vector<1x8xf32>
    tpu.vector_store %arg7[%c1_151, %c56_152], %247 {strides = array<i32>} : memref<2x112xf32, #tpu.memory_space<vmem>>, vector<1x8xf32>,
    %249 = vector.extract_strided_slice %224 {offsets = [4, 8], sizes = [1, 8], strides = [1, 1]} : vector<8x16xf32> to vector<1x8xf32>
    %c1_153 = arith.constant 1 : index
    %c64_154 = arith.constant 64 : index
    %250 = vector.load %arg7[%c1_153, %c64_154] : memref<2x112xf32, #tpu.memory_space<vmem>>, vector<1x8xf32>
    tpu.vector_store %arg7[%c1_153, %c64_154], %249 {strides = array<i32>} : memref<2x112xf32, #tpu.memory_space<vmem>>, vector<1x8xf32>,
    %251 = vector.extract_strided_slice %224 {offsets = [5, 8], sizes = [1, 8], strides = [1, 1]} : vector<8x16xf32> to vector<1x8xf32>
    %c1_155 = arith.constant 1 : index
    %c72_156 = arith.constant 72 : index
    %252 = vector.load %arg7[%c1_155, %c72_156] : memref<2x112xf32, #tpu.memory_space<vmem>>, vector<1x8xf32>
    tpu.vector_store %arg7[%c1_155, %c72_156], %251 {strides = array<i32>} : memref<2x112xf32, #tpu.memory_space<vmem>>, vector<1x8xf32>,
    %253 = vector.extract_strided_slice %224 {offsets = [6, 8], sizes = [1, 8], strides = [1, 1]} : vector<8x16xf32> to vector<1x8xf32>
    %c1_157 = arith.constant 1 : index
    %c80_158 = arith.constant 80 : index
    %254 = vector.load %arg7[%c1_157, %c80_158] : memref<2x112xf32, #tpu.memory_space<vmem>>, vector<1x8xf32>
    tpu.vector_store %arg7[%c1_157, %c80_158], %253 {strides = array<i32>} : memref<2x112xf32, #tpu.memory_space<vmem>>, vector<1x8xf32>,
    %255 = vector.extract_strided_slice %224 {offsets = [7, 8], sizes = [1, 8], strides = [1, 1]} : vector<8x16xf32> to vector<1x8xf32>
    %c1_159 = arith.constant 1 : index
    %c88_160 = arith.constant 88 : index
    %256 = vector.load %arg7[%c1_159, %c88_160] : memref<2x112xf32, #tpu.memory_space<vmem>>, vector<1x8xf32>
    tpu.vector_store %arg7[%c1_159, %c88_160], %255 {strides = array<i32>} : memref<2x112xf32, #tpu.memory_space<vmem>>, vector<1x8xf32>,
    %c0_161 = arith.constant 0 : index
    %c0_162 = arith.constant 0 : index
    %257 = vector.load %arg3[%c0_161, %c0_162] : memref<2x8xf32, #tpu.memory_space<vmem>>, vector<2x8xf32>
    %c96 = arith.constant 96 : index
    %c0_163 = arith.constant 0 : index
    %258 = vector.load %arg4[%c96, %c0_163] : memref<272x32xf32, #tpu.memory_space<vmem>>, vector<8x16xf32>
    %c104 = arith.constant 104 : index
    %c0_164 = arith.constant 0 : index
    %259 = vector.load %arg4[%c104, %c0_164] : memref<272x32xf32, #tpu.memory_space<vmem>>, vector<1x16xf32>
    %cst_165 = arith.constant dense<0.000000e+00> : vector<2x16xf32>
    %260 = tpu.matmul %257, %258, %cst_165 {dimension_numbers = #tpu.dot_dimension_numbers<[1], [0], [0], [1], [0, 0, 1, 1], [], []>} : vector<2x8xf32>, vector<8x16xf32>, vector<2x16xf32> -> vector<2x16xf32>
    %261 = vector.broadcast %259 : vector<1x16xf32> to vector<2x16xf32>
    %262 = arith.addf %260, %261 : vector<2x16xf32>
    %cst_166 = arith.constant 0.000000e+00 : f32
    %263 = vector.broadcast %cst_166 : f32 to vector<2x16xf32>
    %264 = arith.maximumf %262, %263 : vector<2x16xf32>
    %c0_167 = arith.constant 0 : index
    %c96_168 = arith.constant 96 : index
    %265 = vector.load %arg7[%c0_167, %c96_168] : memref<2x112xf32, #tpu.memory_space<vmem>>, vector<2x16xf32>
    tpu.vector_store %arg7[%c0_167, %c96_168], %264 {strides = array<i32>} : memref<2x112xf32, #tpu.memory_space<vmem>>, vector<2x16xf32>,
    %c0_169 = arith.constant 0 : index
    %c0_170 = arith.constant 0 : index
    %266 = vector.load %arg7[%c0_169, %c0_170] : memref<2x112xf32, #tpu.memory_space<vmem>>, vector<2x112xf32>
    %c112 = arith.constant 112 : index
    %c0_171 = arith.constant 0 : index
    %267 = vector.load %arg4[%c112, %c0_171] : memref<272x32xf32, #tpu.memory_space<vmem>>, vector<112x32xf32>
    %c224 = arith.constant 224 : index
    %c0_172 = arith.constant 0 : index
    %268 = vector.load %arg4[%c224, %c0_172] : memref<272x32xf32, #tpu.memory_space<vmem>>, vector<1x32xf32>
    %cst_173 = arith.constant dense<0.000000e+00> : vector<2x32xf32>
    %269 = tpu.matmul %266, %267, %cst_173 {dimension_numbers = #tpu.dot_dimension_numbers<[1], [0], [0], [1], [0, 0, 1, 1], [], []>} : vector<2x112xf32>, vector<112x32xf32>, vector<2x32xf32> -> vector<2x32xf32>
    %270 = vector.broadcast %268 : vector<1x32xf32> to vector<2x32xf32>
    %271 = arith.addf %269, %270 : vector<2x32xf32>
    %cst_174 = arith.constant 0.000000e+00 : f32
    %272 = vector.broadcast %cst_174 : f32 to vector<2x32xf32>
    %273 = arith.maximumf %271, %272 : vector<2x32xf32>
    %c232 = arith.constant 232 : index
    %c0_175 = arith.constant 0 : index
    %274 = vector.load %arg4[%c232, %c0_175] : memref<272x32xf32, #tpu.memory_space<vmem>>, vector<32x4xf32>
    %c264 = arith.constant 264 : index
    %c0_176 = arith.constant 0 : index
    %275 = vector.load %arg4[%c264, %c0_176] : memref<272x32xf32, #tpu.memory_space<vmem>>, vector<1x4xf32>
    %cst_177 = arith.constant dense<0.000000e+00> : vector<2x4xf32>
    %276 = tpu.matmul %273, %274, %cst_177 {dimension_numbers = #tpu.dot_dimension_numbers<[1], [0], [0], [1], [0, 0, 1, 1], [], []>} : vector<2x32xf32>, vector<32x4xf32>, vector<2x4xf32> -> vector<2x4xf32>
    %277 = vector.broadcast %275 : vector<1x4xf32> to vector<2x4xf32>
    %278 = arith.addf %276, %277 : vector<2x4xf32>
    %c0_178 = arith.constant 0 : index
    %c0_179 = arith.constant 0 : index
    %279 = vector.load %arg5[%c0_178, %c0_179] : memref<2x4xf32, #tpu.memory_space<vmem>>, vector<2x4xf32>
    tpu.vector_store %arg5[%c0_178, %c0_179], %278 {strides = array<i32>} : memref<2x4xf32, #tpu.memory_space<vmem>>, vector<2x4xf32>,
    return
  }
  func.func @transform_0(%arg0: i32) -> (i32, i32, i32) {
    %c0_i32 = arith.constant 0 : i32
    %c0_i32_0 = arith.constant 0 : i32
    %c0_i32_1 = arith.constant 0 : i32
    %c0_i32_2 = arith.constant 0 : i32
    return %c0_i32, %c0_i32_0, %c0_i32_1 : i32, i32, i32
  }
  func.func @transform_1(%arg0: i32) -> (i32, i32, i32) {
    %c0_i32 = arith.constant 0 : i32
    %c0_i32_0 = arith.constant 0 : i32
    %c0_i32_1 = arith.constant 0 : i32
    %c0_i32_2 = arith.constant 0 : i32
    return %c0_i32, %c0_i32_0, %c0_i32_1 : i32, i32, i32
  }
  func.func @transform_2(%arg0: i32) -> (i32, i32) {
    %c0_i32 = arith.constant 0 : i32
    %c0_i32_0 = arith.constant 0 : i32
    %c0_i32_1 = arith.constant 0 : i32
    return %c0_i32, %c0_i32_0 : i32, i32
  }
  func.func @transform_3(%arg0: i32) -> (i32, i32) {
    %c0_i32 = arith.constant 0 : i32
    %c0_i32_0 = arith.constant 0 : i32
    %c0_i32_1 = arith.constant 0 : i32
    return %c0_i32, %c0_i32_0 : i32, i32
  }
  func.func @transform_4(%arg0: i32) -> (i32, i32) {
    %c0_i32 = arith.constant 0 : i32
    %c0_i32_0 = arith.constant 0 : i32
    %c0_i32_1 = arith.constant 0 : i32
    return %c0_i32, %c0_i32_0 : i32, i32
  }
}

</mosaic_0001>

<bundles_post_ra>
// kernel: forward.1
= control target key start
LH: loop header
LB: loop body
LE: loop exit
PB: predicated region body
PF: predicated region fallthrough
CT: control target
= control target key end

     0   :  { %s793_s17 = smov 1   ;;  %s1053_s0 = inlined_call_operand.vmem [shape: f32[2,4,16], index: 0, kind: input, shape index: {}]   ;;  %s1054_s1 = inlined_call_operand.vmem [shape: f32[2,6,16], index: 1, kind: input, shape index: {}]   ;;  %s1055_s2 = inlined_call_operand.vmem [shape: f32[2,8], index: 2, kind: input, shape index: {}]   ;;  %s1056_s3 = inlined_call_operand.vmem [shape: f32[272,32], index: 3, kind: input, shape index: {}]   ;;  %s1057_s4 = inlined_call_operand.hbm [shape: f32[2,4], index: 4, kind: output, shape index: {}]  }
   0x1   :  { %v18_v0 = vld [vmem:[%s1053_s0] sm:$0xf] }
   0x2   :  { %20 = vrot.lane.b32.xlu0 %v18_v0, %s793_s17 }
   0x3   :  { %9 = vsyncpa [#allocation5], 0  ;;  %v702_v1 = vld [vmem:[%s1053_s0 + $0x4] sm:$0xf]  ;;  %s794_s20 = smov 17   ;;  %vm23_vm0 = vcmask 134152   ;;  %v34_v3 = vlaneseq }
   0x4   :  { %vm31_vm1 = vcmask 265352   ;;  %vm70_vm3 = vcmask 1043456   ;;  %s795_s0 = smov 126   ;;  %s796_s21 = smov 127   ;;  %v60_v10 = vld [vmem:[%s1056_s3] sm:$0xff]  ;;  %vm66_vm4 = vcmask 31744  }
   0x5   :  { %v850_v4 = vand.u32 127, %v34_v3  ;;  %v63_v11 = vld [vmem:[%s1056_s3 + $0x18] sm:$0xff]  ;;  %v797_v12 = vmov 0   ;;  %v62_v15 = vld [vmem:[%s1056_s3 + $0x10] sm:$0xff]  ;;  %v61_v17 = vld [vmem:[%s1056_s3 + $0x8] sm:$0xff]  ;;  %v154_v19 = vshrl.u32 %v34_v3, 7 }
   0x6   :  { %761 = vset.pattern.permute.xlu2 %v797_v12  ;;  %762 = vset.pattern.permute.xlu0 %v797_v12  ;;  %v798_v25 = vmov 0.5   ;;  %v389_v30 = vld [vmem:[%s1054_s1] sm:$0x3f]  ;;  %v722_v31 = vld [vmem:[%s1054_s1 + $0x8] sm:$0x3f]  ;;  %v234_v50 = vld [vmem:[%s1056_s3 + $0x38] sm:$0xff] }
   0x7   :  { %v40_v6 = vand.u32 15, %v850_v4  ;;  %148 = vperm.xlu2 %761, %v63_v11   ;;  %763 = vset.pattern.permute.xlu1 %v797_v12  ;;  %v158_v20 = vmul.u32 2, %v850_v4  ;;  %v157_v21 = vadd.s32 24, %v154_v19  ;;  %v156_v23 = vadd.s32 16, %v154_v19  ;;  %v232_v49 = vld [vmem:[%s1056_s3 + $0x28] sm:$0xff]  ;;  %v411_v51 = vld [vmem:[%s1056_s3 + $0x40] sm:$0xff] }
   0x8   :  { %v155_v26 = vadd.s32 8, %v154_v19  ;;  %v211_v47 = vand.u32 7, %v850_v4  ;;  %v414_v52 = vld [vmem:[%s1056_s3 + $0x58] sm:$0xff]  ;;  %v231_v53 = vld [vmem:[%s1056_s3 + $0x20] sm:$0xff]  ;;  %v412_v55 = vld [vmem:[%s1056_s3 + $0x48] sm:$0xff]  ;;  %s800_s26 = smov 4  }
   0x9   :  { %vm853_vm2 = vcmp.ne.s32.totalorder %v40_v6, 0  ;;  %vm869_vm5 = vcmp.ne.s32.totalorder %v40_v6, 15  ;;  %v163_v22 = vadd.s32 1, %v158_v20  ;;  %vm162_vm6 = vcmp.eq.s32.totalorder %v157_v21, %v158_v20  ;;  %v233_v56 = vld [vmem:[%s1056_s3 + $0x30] sm:$0xff]  ;;  %v580_v61 = vld [vmem:[%s1056_s3 + $0x60] sm:$0xff]  ;;  %s801_s27 = smov 124  }
   0xa   :  { %28 = vrot.lane.b32.xlu0 %v702_v1, %s794_s20  ;;  %vm161_vm9 = vcmp.eq.s32.totalorder %v156_v23, %v158_v20  ;;  %vm160_vm12 = vcmp.eq.s32.totalorder %v155_v26, %v158_v20  ;;  %vm159_vm15 = vcmp.eq.s32.totalorder %v154_v19, %v158_v20  ;;  %v413_v59 = vld [vmem:[%s1056_s3 + $0x50] sm:$0xff]  ;;  %v579_v62 = vld [vmem:[%s1055_s2] sm:$0x3]  ;;  %s799_s2 = smov 12   ;;  %s802_s28 = smov 24  }
   0xb   :  { %vm167_vm7 = vcmp.eq.s32.totalorder %v157_v21, %v163_v22  ;;  %vm166_vm10 = vcmp.eq.s32.totalorder %v156_v23, %v163_v22  ;;  %vm165_vm13 = vcmp.eq.s32.totalorder %v155_v26, %v163_v22  ;;  %s803_s29 = smov 16   ;;  %s804_s30 = smov 8   ;;  %v627_v23 = vld [vmem:[%s1056_s3 + $0xd8] sm:$0xff]  ;;  %v626_v24 = vld [vmem:[%s1056_s3 + $0xd0] sm:$0xff]  ;;  %v624_v26 = vld [vmem:[%s1056_s3 + $0xc0] sm:$0xff] }
   0xc   :  { %vm886_vm8 = vmor %vm162_vm6, %vm167_vm7  ;;  %vm394_vm6 = vcmask 136200   ;;  %vm402_vm7 = vcmask 267400   ;;  %s805_s5 = smov 28   ;;  %s806_s6 = smov 20  }
   0xd   :  { %vm892_vm11 = vmor %vm161_vm9, %vm166_vm10  ;;  %vm219_vm9 = vcmp.ne.s32.totalorder %v211_v47, 0  ;;  %vm238_vm10 = vcmask 64512   ;;  %s807_s7 = smov 40   ;;  %s808_s1 = smov 56  }
   0xe   :  { %vm898_vm14 = vmor %vm160_vm12, %vm165_vm13  ;;  %vm340_vm12 = vcmask 24576   ;;  %s809_s8 = smov 32   ;;  %s810_s9 = smov 64   ;;  %vm346_vm13 = vcmask 58401  }
   0xf   :  { %s811_s10 = smov 80   ;;  %s812_s11 = smov 48  }
  0x10   :  { %s813_s14 = smov 88   ;;  %s814_s15 = smov 72  }
  0x11   :  { %s815_s16 = smov 96  }
  0x12   :  { %391 = vrot.lane.b32.xlu0 %v389_v30, %s793_s17  ;;  %v623_v30 = vld [vmem:[%s1056_s3 + $0xb8] sm:$0xff] }
  0x61   :  { %v149_v36 = vpop.permute.xlu2 %148 }
  0x74   :  { %v21_v2 = vpop.permute.xlu0 %20 }
  0x75   :  { %24 = vst.msk [vmem:[#allocation2] sm:$0xf] %vm23_vm0, %v21_v2  ;;  %vm164_vm0 = vcmp.eq.s32.totalorder %v154_v19, %v163_v22 }
  0x7c   :  { %v29_v5 = vpop.permute.xlu0 %28 }
  0x7d   :  { %32 = vst.msk [vmem:[#allocation2] sm:$0xf] %vm31_vm1, %v29_v5  ;;  %vm904_vm1 = vmor %vm159_vm15, %vm164_vm0  ;;  %vm356_vm15 = vcmask 126051   ;;  %vm361_vm0 = vcmask 159876  }
  0x84   :  { %v33_v8 = vld [vmem:[#allocation2] sm:$0xf]  ;;  %v392_v42 = vpop.permute.xlu0 %391 }
  0x85   :  { %56 = vrot.lane.b32.xlu1 %v33_v8, %s795_s0  ;;  %v51_v9 = vsel %vm853_vm2, %v33_v8, 0.0 }
  0x86   :  { %705 = vmatpush.msk.msra.mxu3 %vm70_vm3, %v51_v9 }
  0x87   :  { %706 = vmatmul.msk.f32.vlgmr.msra.gmra.mxu3 %vm66_vm4, %v60_v10 }
  0x88   :  { %709 = vmatpush.msk.msrb.mxu3 %vm886_vm8, %v798_v25 }
  0x8a   :  { %710 = vmatpush.msk.msrb.mxu3 %vm892_vm11, %v798_v25 }
  0x8c   :  { %711 = vmatpush.msk.msrb.mxu3 %vm898_vm14, %v798_v25 }
  0x8d   :  { %64 = vrot.lane.b32.xlu1 %v33_v8, %s796_s21 }
  0x8e   :  { %712 = vmatpush.msk.msrb.mxu3 %vm904_vm1, %v798_v25 }
  0x90   :  { %719 = vmatpush.msk.msra.mxu3 %vm898_vm14, %v798_v25 }
  0x92   :  { %720 = vmatpush.msk.msra.mxu3 %vm904_vm1, %v798_v25 }
  0x95   :  { %399 = vrot.lane.b32.xlu1 %v722_v31, %s794_s20  ;;  %v622_v31 = vld [vmem:[%s1056_s3 + $0xb0] sm:$0xff] }
  0xf7   :  { %v57_v14 = vpop.permute.xlu1 %56 }
  0xf8   :  { %v59_v16 = vsel %vm869_vm5, %v57_v14, 0.0 }
  0xf9   :  { %707 = vmatpush.msk.msra.mxu2 %vm70_vm3, %v59_v16 }
  0xfa   :  { %708 = vmatmul.msk.f32.vlgmr.msra.gmra.mxu2 %vm66_vm4, %v62_v15 }
  0xff   :  { %v65_v18 = vpop.permute.xlu1 %64 }
 0x100   :  { %703 = vmatpush.msk.msra.mxu0 %vm70_vm3, %v65_v18  ;;  %vm176_vm3 = vcmask 261120  }
 0x101   :  { %704 = vmatmul.msk.f32.vlgmr.msra.gmra.mxu0 %vm66_vm4, %v61_v17  ;;  %vm204_vm4 = vcmask 138248   ;;  %v764_v17 = vld [vmem:[%s1056_s3 + $0x68] ss:$0 sm:$0xff] }
 0x107   :  { %v400_v43 = vpop.permute.xlu1 %399 }
 0x10a   :  { %v116_v32 = vpop.f32.mrf.mxu3 }
 0x17d   :  { %v142_v34 = vpop.f32.mrf.mxu2 }
 0x17e   :  { %v90_v33 = vpop.f32.mrf.mxu0 }
 0x17f   :  { %v117_v35 = vadd.f32 %v116_v32, %v90_v33  ;;  %v621_v32 = vld [vmem:[%s1056_s3 + $0xa8] sm:$0xff]  ;;  %v620_v33 = vld [vmem:[%s1056_s3 + $0xa0] sm:$0xff] }
 0x181   :  { %v145_v37 = vadd.f32 %v142_v34, %v117_v35 }
 0x183   :  { %v151_v38 = vadd.f32 %v149_v36, %v145_v37  ;;  %v619_v36 = vld [vmem:[%s1056_s3 + $0x98] sm:$0xff]  ;;  %v618_v37 = vld [vmem:[%s1056_s3 + $0x90] sm:$0xff] }
 0x185   :  { %v152_v39 = vmax.f32 %v151_v38, 0.0 }
 0x187   :  { %713 = vmatmul.msk.f32.vlgmr.msrb.gmra.mxu3 %vm176_vm3, %v152_v39  ;;  %v617_v39 = vld [vmem:[%s1056_s3 + $0x88] sm:$0xff] }
 0x188   :  { %729 = vmatpush.msk.msrb.mxu3 %vm886_vm8, %v798_v25  ;;  %vm421_vm8 = vcmask 1045504  }
 0x18a   :  { %730 = vmatpush.msk.msrb.mxu3 %vm892_vm11, %v798_v25  ;;  %vm417_vm11 = vcmask 48128  }
 0x18c   :  { %731 = vmatpush.msk.msrb.mxu3 %vm898_vm14, %v798_v25  ;;  %vm351_vm14 = vcmask 92226  }
 0x18e   :  { %732 = vmatpush.msk.msrb.mxu3 %vm904_vm1, %v798_v25  ;;  %v625_v25 = vld [vmem:[%s1056_s3 + $0xc8] sm:$0xff]  ;;  %vm366_vm1 = vcmask 193701  }
 0x20a   :  { %v197_v40 = vpop.f32.mrf.mxu3 }
 0x20b   :  { %201 = vrot.lane.b32.xlu2 %v197_v40, %s793_s17  ;;  %v616_v40 = vld [vmem:[%s1056_s3 + $0x80] sm:$0xff] }
 0x265   :  { %v202_v41 = vpop.permute.xlu2 %201 }
 0x266   :  { %205 = vst.msk [vmem:[#allocation2] sm:$0xff] %vm204_vm4, %v202_v41  ;;  %vm371_vm4 = vcmask 227526   ;;  %v615_v41 = vld [vmem:[%s1056_s3 + $0x78] sm:$0xff] }
 0x26d   :  { %v206_v44 = vld [vmem:[#allocation2] sm:$0xff] }
 0x26e   :  { %227 = vrot.lane.b32.xlu0 %v206_v44, %s795_s0  ;;  %235 = vrot.lane.b32.xlu2 %v206_v44, %s796_s21  ;;  %395 = vst.msk [vmem:[#allocation2] sm:$0x3f] %vm394_vm6, %v392_v42  ;;  %vm376_vm6 = vcmask 261351  }
 0x26f   :  { %403 = vst.msk [vmem:[#allocation2] sm:$0x3f] %vm402_vm7, %v400_v43  ;;  %vm531_vm7 = vcmask 319744  }
 0x276   :  { %v404_v45 = vld [vmem:[#allocation2] sm:$0x3f]  ;;  %311 = vperm.xlu0 %762, %v234_v50  }
 0x277   :  { %407 = vrot.lane.b32.xlu1 %v404_v45, %s795_s0  ;;  %415 = vrot.lane.b32.xlu2 %v404_v45, %s796_s21  ;;  %v405_v46 = vsel %vm853_vm2, %v404_v45, 0.0  ;;  %vm223_vm2 = vcmp.ne.s32.totalorder %v211_v47, 7  ;;  %v658_v45 = vld [vmem:[%s1056_s3 + $0x100] sm:$0xff] }
 0x278   :  { %725 = vmatpush.msk.msra.mxu1 %vm421_vm8, %v405_v46  ;;  %v657_v46 = vld [vmem:[%s1056_s3 + $0xf8] sm:$0xff] }
 0x279   :  { %726 = vmatmul.msk.f32.vlgmr.msra.gmra.mxu1 %vm417_vm11, %v411_v51 }
 0x27a   :  { %636 = vmatpush.msrb.mxu1 %v627_v23 }
 0x27c   :  { %637 = vmatpush.msrb.mxu1 %v626_v24 }
 0x27e   :  { %638 = vmatpush.msrb.mxu1 %v625_v25 }
 0x27f   :  { %499 = vperm.xlu1 %763, %v414_v52  }
 0x280   :  { %639 = vmatpush.msrb.mxu1 %v624_v26 }
 0x282   :  { %640 = vmatpush.msrb.mxu1 %v623_v30 }
 0x284   :  { %641 = vmatpush.msrb.mxu1 %v622_v31 }
 0x286   :  { %642 = vmatpush.msrb.mxu1 %v621_v32 }
 0x288   :  { %643 = vmatpush.msrb.mxu1 %v620_v33 }
 0x28a   :  { %644 = vmatpush.msrb.mxu1 %v619_v36 }
 0x28c   :  { %645 = vmatpush.msrb.mxu1 %v618_v37 }
 0x28e   :  { %646 = vmatpush.msrb.mxu1 %v617_v39 }
 0x290   :  { %647 = vmatpush.msrb.mxu1 %v616_v40 }
 0x292   :  { %648 = vmatpush.msrb.mxu1 %v615_v41 }
 0x2c8   :  { %v236_v48 = vpop.permute.xlu2 %235 }
 0x2c9   :  { %257 = vmatpush.msrb.mxu0 %v236_v48 }
 0x2ca   :  { %714 = vmatmul.msk.f32.vlgmr.msrb.gmra.mxu0 %vm238_vm10, %v232_v49 }
 0x2cb   :  { %715 = vmatpush.msk.msra.mxu0 %vm219_vm9, %v206_v44  ;;  %v614_v44 = vld [vmem:[%s1056_s3 + $0x70] sm:$0xff]  ;;  %vm541_vm9 = vcmask 452994  }
 0x2cc   :  { %649 = vmatpush.msrb.mxu1 %v614_v44 }
 0x2d1   :  { %v416_v54 = vpop.permute.xlu2 %415 }
 0x2d2   :  { %723 = vmatpush.msk.msrb.mxu0 %vm421_vm8, %v416_v54 }
 0x2d3   :  { %716 = vmatmul.msk.f32.vlgmr.msra.gmra.mxu0 %vm238_vm10, %v231_v53 }
 0x2d4   :  { %601 = vmatpush.msra.mxu0 %v580_v61 }
 0x2db   :  { %724 = vmatmul.msk.f32.vlgmr.msrb.gmra.mxu0 %vm417_vm11, %v412_v55 }
 0x2e0   :  { %v228_v57 = vpop.permute.xlu0 %227 }
 0x2e1   :  { %717 = vmatpush.msk.msrb.mxu2 %vm223_vm2, %v228_v57  ;;  %vm556_vm2 = vcmask 652869   ;;  %v655_v57 = vld [vmem:[%s1056_s3 + $0xe8] sm:$0xff] }
 0x2e2   :  { %718 = vmatmul.msk.f32.vlgmr.msrb.gmra.mxu2 %vm238_vm10, %v233_v56  ;;  %v656_v56 = vld [vmem:[%s1056_s3 + $0xf0] sm:$0xff] }
 0x2e3   :  { %734 = vmatmul.msk.f32.vlgmr.msra.gmra.mxu0 %vm238_vm10, %v579_v62  ;;  %vm546_vm10 = vcmask 519619   ;;  %v766_v62 = vld [vmem:[%s1056_s3 + $0x108] ss:$0 sm:$0xff] }
 0x2e8   :  { %v312_v3 = vpop.permute.xlu0 %311 }
 0x2e9   :  { %v408_v58 = vpop.permute.xlu1 %407 }
 0x2ea   :  { %v410_v60 = vsel %vm869_vm5, %v408_v58, 0.0  ;;  %vm316_vm5 = vcmask 130048   ;;  %v765_v58 = vld [vmem:[%s1056_s3 + $0xe0] ss:$0 sm:$0xff] }
 0x2eb   :  { %727 = vmatpush.msk.msra.mxu2 %vm421_vm8, %v410_v60  ;;  %vm536_vm8 = vcmask 386369  }
 0x2ec   :  { %728 = vmatmul.msk.f32.vlgmr.msra.gmra.mxu2 %vm417_vm11, %v413_v59  ;;  %vm551_vm11 = vcmask 586244  }
 0x2ed   :  { %676 = vmatpush.msrb.mxu2 %v658_v45 }
 0x2ef   :  { %677 = vmatpush.msrb.mxu2 %v657_v46 }
 0x2f1   :  { %v500_v11 = vpop.permute.xlu1 %499  ;;  %678 = vmatpush.msrb.mxu2 %v656_v56 }
 0x2f3   :  { %679 = vmatpush.msrb.mxu2 %v655_v57 }
 0x2f6   :  { %v467_v7 = vpop.f32.mrf.mxu1 }
 0x347   :  { %v259_v63 = vpop.f32.mrf.mxu0 }
 0x350   :  { %v282_v0 = vpop.f32.mrf.mxu0 }
 0x351   :  { %v283_v1 = vadd.f32 %v282_v0, %v259_v63 }
 0x358   :  { %v441_v6 = vpop.f32.mrf.mxu0 }
 0x359   :  { %v468_v9 = vadd.f32 %v467_v7, %v441_v6 }
 0x360   :  { %v603_v18 = vpop.f32.mrf.mxu0 }
 0x361   :  { %v604_v19 = vadd.f32 %v764_v17, %v603_v18 }
 0x363   :  { %v606_v20 = vmax.f32 %v604_v19, 0.0 }
 0x365   :  { %v305_v2 = vpop.f32.mrf.mxu2 }
 0x366   :  { %v308_v4 = vadd.f32 %v305_v2, %v283_v1 }
 0x368   :  { %v314_v5 = vadd.f32 %v312_v3, %v308_v4 }
 0x36a   :  { %v315_v8 = vmax.f32 %v314_v5, 0.0 }
 0x36c   :  { %721 = vmatmul.msk.f32.vlgmr.msra.gmra.mxu3 %vm316_vm5, %v315_v8  ;;  %vm561_vm5 = vcmask 719494  }
 0x36f   :  { %v493_v10 = vpop.f32.mrf.mxu2 }
 0x370   :  { %v496_v12 = vadd.f32 %v493_v10, %v468_v9 }
 0x372   :  { %v502_v13 = vadd.f32 %v500_v11, %v496_v12 }
 0x374   :  { %v503_v14 = vmax.f32 %v502_v13, 0.0 }
 0x376   :  { %733 = vmatmul.msk.f32.vlgmr.msrb.gmra.mxu3 %vm176_vm3, %v503_v14 }
 0x3ef   :  { %v337_v15 = vpop.f32.mrf.mxu3 }
 0x3f0   :  { %353 = vrot.lane.b32.xlu0 %v337_v15, %s799_s2  ;;  %343 = vrot.lane.b32.xlu1 %v337_v15, %s800_s26  ;;  %341 = vst.msk [vmem:[#allocation3] sm:$0x1] %vm340_vm12, %v337_v15  ;;  %s816_s26 = smov [#allocation4]  }
 0x3f1   :  { %378 = vrot.lane.b32.xlu2 %v337_v15, %s801_s27  ;;  %s691_s27 = sshll.u32 %s816_s26, 4  ;;  %s692_s27 = int_to_ptr.vmem [resolvable:$true] %s691_s27 }
 0x3f8   :  { %368 = vrot.lane.b32.xlu0 %v337_v15, %s802_s28  ;;  %358 = vrot.lane.b32.xlu1 %v337_v15, %s803_s29 }
 0x3f9   :  { %348 = vrot.lane.b32.xlu2 %v337_v15, %s804_s30  ;;  %v524_v16 = vpop.f32.mrf.mxu3  ;;  %s693_s30 = sshll.u32 %s1057_s4, 4  ;;  %s694_s30 = int_to_ptr.hbm [resolvable:$true] %s693_s30 }
 0x400   :  { %373 = vrot.lane.b32.xlu1 %v337_v15, %s805_s5  ;;  %568 = vrot.lane.b32.xlu0 %v524_v16, %s802_s28 }
 0x401   :  { %363 = vrot.lane.b32.xlu2 %v337_v15, %s806_s6 }
 0x408   :  { %533 = vrot.lane.b32.xlu1 %v524_v16, %s807_s7  ;;  %543 = vrot.lane.b32.xlu0 %v524_v16, %s808_s1 }
 0x409   :  { %528 = vrot.lane.b32.xlu2 %v524_v16, %s809_s8 }
 0x410   :  { %548 = vrot.lane.b32.xlu1 %v524_v16, %s810_s9  ;;  %558 = vrot.lane.b32.xlu0 %v524_v16, %s811_s10 }
 0x411   :  { %538 = vrot.lane.b32.xlu2 %v524_v16, %s812_s11 }
 0x418   :  { %563 = vrot.lane.b32.xlu1 %v524_v16, %s813_s14 }
 0x419   :  { %553 = vrot.lane.b32.xlu2 %v524_v16, %s814_s15 }
 0x421   :  { %608 = vrot.lane.b32.xlu2 %v606_v20, %s815_s16 }
 0x44b   :  { %v379_v21 = vpop.permute.xlu2 %378 }
 0x44c   :  { %381 = vst.msk [vmem:[#allocation3 + $0x1] sm:$0x1] %vm340_vm12, %v379_v21  ;;  %vm566_vm12 = vcmask 786119  }
 0x44d   :  { %382 = vst.msk [vmem:[#allocation3] sm:$0x2] %vm346_vm13, %v337_v15 }
 0x453   :  { %v349_v22 = vpop.permute.xlu2 %348 }
 0x45b   :  { %v364_v29 = vpop.permute.xlu2 %363 }
 0x462   :  { %v354_v27 = vpop.permute.xlu0 %353  ;;  %v344_v28 = vpop.permute.xlu1 %343 }
 0x463   :  { %347 = vst.msk [vmem:[#allocation3 - $0x1] sm:$0x2] %vm346_vm13, %v344_v28  ;;  %v529_v38 = vpop.permute.xlu2 %528  ;;  %vm611_vm13 = vcmask 911104  }
 0x464   :  { %352 = vst.msk [vmem:[#allocation3 - $0x2] sm:$0x4] %vm351_vm14, %v349_v22 }
 0x465   :  { %383 = vst.msk [vmem:[#allocation3 - $0x1] sm:$0x4] %vm351_vm14, %v344_v28  ;;  %vm630_vm14 = vcmask 916480  }
 0x466   :  { %384 = vst.msk [vmem:[#allocation3 - $0x2] sm:$0x8] %vm356_vm15, %v349_v22 }
 0x467   :  { %357 = vst.msk [vmem:[#allocation3 - $0x3] sm:$0x8] %vm356_vm15, %v354_v27  ;;  %vm684_vm15 = vcmask 25600  }
 0x468   :  { %385 = vst.msk [vmem:[#allocation3 - $0x3] sm:$0x10] %vm361_vm0, %v354_v27 }
 0x46a   :  { %v369_v34 = vpop.permute.xlu0 %368  ;;  %v359_v35 = vpop.permute.xlu1 %358 }
 0x46b   :  { %362 = vst.msk [vmem:[#allocation3 - $0x4] sm:$0x10] %vm361_vm0, %v359_v35  ;;  %v539_v47 = vpop.permute.xlu2 %538 }
 0x46c   :  { %367 = vst.msk [vmem:[#allocation3 - $0x5] sm:$0x20] %vm366_vm1, %v364_v29 }
 0x46d   :  { %386 = vst.msk [vmem:[#allocation3 - $0x4] sm:$0x20] %vm366_vm1, %v359_v35 }
 0x46e   :  { %387 = vst.msk [vmem:[#allocation3 - $0x5] sm:$0x40] %vm371_vm4, %v364_v29 }
 0x46f   :  { %372 = vst.msk [vmem:[#allocation3 - $0x6] sm:$0x40] %vm371_vm4, %v369_v34 }
 0x470   :  { %388 = vst.msk [vmem:[#allocation3 - $0x6] sm:$0x80] %vm376_vm6, %v369_v34 }
 0x472   :  { %v374_v42 = vpop.permute.xlu1 %373  ;;  %v569_v43 = vpop.permute.xlu0 %568 }
 0x473   :  { %377 = vst.msk [vmem:[#allocation3 - $0x7] sm:$0x80] %vm376_vm6, %v374_v42  ;;  %v554_v50 = vpop.permute.xlu2 %553 }
 0x474   :  { %571 = vst.msk [vmem:[#allocation3 + $0x1] sm:$0x1] %vm531_vm7, %v569_v43 }
 0x475   :  { %532 = vst.msk [vmem:[#allocation3] sm:$0x1] %vm531_vm7, %v529_v38 }
 0x476   :  { %572 = vst.msk [vmem:[#allocation3] sm:$0x2] %vm536_vm8, %v529_v38 }
 0x47a   :  { %v534_v48 = vpop.permute.xlu1 %533  ;;  %v544_v49 = vpop.permute.xlu0 %543 }
 0x47b   :  { %537 = vst.msk [vmem:[#allocation3 - $0x1] sm:$0x2] %vm536_vm8, %v534_v48  ;;  %v609_v53 = vpop.permute.xlu2 %608 }
 0x47c   :  { %573 = vst.msk [vmem:[#allocation3 - $0x1] sm:$0x4] %vm541_vm9, %v534_v48 }
 0x47d   :  { %542 = vst.msk [vmem:[#allocation3 - $0x2] sm:$0x4] %vm541_vm9, %v539_v47 }
 0x47e   :  { %547 = vst.msk [vmem:[#allocation3 - $0x3] sm:$0x8] %vm546_vm10, %v544_v49 }
 0x47f   :  { %574 = vst.msk [vmem:[#allocation3 - $0x2] sm:$0x8] %vm546_vm10, %v539_v47 }
 0x480   :  { %575 = vst.msk [vmem:[#allocation3 - $0x3] sm:$0x10] %vm551_vm11, %v544_v49 }
 0x482   :  { %v549_v51 = vpop.permute.xlu1 %548  ;;  %v559_v52 = vpop.permute.xlu0 %558 }
 0x483   :  { %552 = vst.msk [vmem:[#allocation3 - $0x4] sm:$0x10] %vm551_vm11, %v549_v51 }
 0x484   :  { %576 = vst.msk [vmem:[#allocation3 - $0x4] sm:$0x20] %vm556_vm2, %v549_v51 }
 0x485   :  { %557 = vst.msk [vmem:[#allocation3 - $0x5] sm:$0x20] %vm556_vm2, %v554_v50 }
 0x486   :  { %562 = vst.msk [vmem:[#allocation3 - $0x6] sm:$0x40] %vm561_vm5, %v559_v52 }
 0x487   :  { %577 = vst.msk [vmem:[#allocation3 - $0x5] sm:$0x40] %vm561_vm5, %v554_v50 }
 0x488   :  { %578 = vst.msk [vmem:[#allocation3 - $0x6] sm:$0x80] %vm566_vm12, %v559_v52 }
 0x48a   :  { %v564_v54 = vpop.permute.xlu1 %563 }
 0x48b   :  { %567 = vst.msk [vmem:[#allocation3 - $0x7] sm:$0x80] %vm566_vm12, %v564_v54 }
 0x48c   :  { %612 = vst.msk [vmem:[#allocation3] sm:$0x3] %vm611_vm13, %v609_v53 }
 0x493   :  { %v613_v55 = vld [vmem:[#allocation3] sm:$0x3] }
 0x494   :  { %735 = vmatmul.msk.f32.vlgmr.msrb.gmra.mxu1 %vm630_vm14, %v613_v55 }
 0x511   :  { %v651_v59 = vpop.f32.mrf.mxu1 }
 0x512   :  { %v652_v60 = vadd.f32 %v765_v58, %v651_v59 }
 0x514   :  { %v654_v61 = vmax.f32 %v652_v60, 0.0 }
 0x516   :  { %736 = vmatmul.msk.f32.vlgmr.msrb.gmra.mxu2 %vm176_vm3, %v654_v61 }
 0x599   :  { %v681_v63 = vpop.f32.mrf.mxu2 }
 0x59a   :  { %v682_v0 = vadd.f32 %v766_v62, %v681_v63 }
 0x59c   :  { %685 = vst.msk [vmem:[#allocation4] sm:$0x3] %vm684_vm15, %v682_v0 }
 0x59d   :  { %696 = dma.vmem_to_hbm [thread:$0]  %s692_s27, 32, %s694_s30, [#allocation5]  }
 0x59e   :  { %791 = dma.done.wait [#allocation5], 32  }
 0x59f   :  { %792 = vsyncadd [#allocation5], 4294967264 }
 0x5a0   :  { %701 = vsyncpa [#allocation5], 1 }

</bundles_post_ra>
